<compile_context>
chip_gen: v7x
topology: tpu7x:2x2x1
jax: 0.10.0
libtpu: 0.0.40
codegen_flags: <defaults>
</compile_context>

<pallas_src>
import jax
import jax.numpy as jnp
from jax.experimental import pallas as pl
from jax.experimental.pallas import tpu as pltpu


def bilstm_kernel(xp_ref,     # (T*B, 2E) bf16: row t*B+b = [emb[b, t] | emb[b, T-1-t]]
                  w_in_ref,   # (2E, 8H)  bf16: block-diag input weights, per-gate [fwd|bwd] cols
                  b_ref,      # (1, 8H)   f32 : per-gate [fwd|bwd] biases
                  w_rec_ref,  # (2H, 8H)  bf16: block-diag recurrent weights
                  wlin_ref,   # (2H, 2)   f32 : classifier weight
                  blin_ref,   # (1, 2)    f32 : classifier bias
                  out_ref):   # (B, 2)    f32 : log-probs
    B = out_ref.shape[0]
    TB = xp_ref.shape[0]
    T = TB // B                       # Python int (static)
    H2 = w_rec_ref.shape[0]           # 2H

    # ---- Prologue: ONE MXU matmul for all input projections (both directions, all T steps),
    #      biases folded in.  Result is lane-dense (T*B, 8H) and lives in vregs (no scratch).
    xproj = jnp.dot(xp_ref[...], w_in_ref[...],
                    preferred_element_type=jnp.float32) + b_ref[...]      # (T*B, 8H) f32

    w_rec = w_rec_ref[...]            # (2H, 8H) bf16, hoisted once

    # ---- Recurrence: one fused block-diagonal MXU matmul per step.  Hidden dim rides the
    #      lane axis so every gate slice is a static 2H-lane slice and the cell update is
    #      pure lane-dense VPU/EUP math.  T is a Python int -> fully static unroll.
    h = jnp.zeros((B, H2), jnp.float32)          # [h_f | h_b] on lanes
    c = jnp.zeros((B, H2), jnp.float32)          # [c_f | c_b] on lanes
    for t in range(T):
        z = xproj[t * B:(t + 1) * B, :] + jnp.dot(
            h.astype(jnp.bfloat16), w_rec,
            preferred_element_type=jnp.float32)                           # (B, 8H)
        i_all = jax.nn.sigmoid(z[:, 0 * H2:1 * H2])                       # (B, 2H)
        f_all = jax.nn.sigmoid(z[:, 1 * H2:2 * H2])
        g_all = jnp.tanh(z[:, 2 * H2:3 * H2])
        o_all = jax.nn.sigmoid(z[:, 3 * H2:4 * H2])
        c = f_all * c + i_all * g_all
        h = o_all * jnp.tanh(c)

    # ---- Classifier head (h is already [h_f | h_b] = hcat) + log_softmax.
    logits = jnp.dot(h, wlin_ref[...],
                     preferred_element_type=jnp.float32) + blin_ref[...]  # (B, 2)
    m = jnp.max(logits, axis=-1, keepdims=True)
    s = logits - m
    lse = jnp.log(jnp.sum(jnp.exp(s), axis=-1, keepdims=True))
    out_ref[...] = s - lse


def pack_params(params):
    """One-time repack: block-diagonal per-gate [fwd|bwd] column blocks, bf16 matmul weights.

    Done once at init (outside the per-call path), per the performance review.
    """
    H = params["whh_f"].shape[0]

    def block_diag(w_f, w_b):
        # (D, 4H) x2 -> (2D, 8H): rows = [fwd features ; bwd features]; columns follow
        # PyTorch gate order (i, f, g, o), each gate block = [fwd H cols | bwd H cols].
        D = w_f.shape[0]
        z = jnp.zeros((D, H), w_f.dtype)
        cols = []
        for g in range(4):
            cols.append(jnp.concatenate([w_f[:, g * H:(g + 1) * H], z], axis=0))
            cols.append(jnp.concatenate([z, w_b[:, g * H:(g + 1) * H]], axis=0))
        return jnp.concatenate(cols, axis=1)

    b_cols = []
    for g in range(4):
        b_cols.append(params["b_f"][:, g * H:(g + 1) * H])
        b_cols.append(params["b_b"][:, g * H:(g + 1) * H])

    return {
        "embedding": params["embedding"],                                     # (V, E)  f32
        "w_in": block_diag(params["wih_f"], params["wih_b"]).astype(jnp.bfloat16),   # (2E, 8H)
        "w_rec": block_diag(params["whh_f"], params["whh_b"]).astype(jnp.bfloat16),  # (2H, 8H)
        "b": jnp.concatenate(b_cols, axis=1),                                 # (1, 8H) f32
        "wlin": params["wlin"],                                               # (2H, 2) f32
        "blin": params["blin"],                                               # (1, 2)  f32
    }


@jax.jit
def bilstm_forward(tokens, packed):
    """tokens: (B, T) int32; packed: output of pack_params. Returns (B, 2) log-probs."""
    emb = jnp.take(packed["embedding"], tokens, axis=0)        # (B, T, E) gather (XLA glue)
    # TODO(synk): dropout is treated as eval-mode identity (no RNG mask applied).
    B, T, E = emb.shape
    H2 = packed["w_rec"].shape[0]                              # 2H
    H = H2 // 2

    emb_t = jnp.transpose(emb, (1, 0, 2))                      # (T, B, E) time-major
    x_pair = jnp.concatenate([emb_t, emb_t[::-1]], axis=-1)    # (T, B, 2E): [fwd_t | bwd_t]
    x_pair = x_pair.reshape(T * B, 2 * E).astype(jnp.bfloat16)

    cost = pl.CostEstimate(
        flops=2 * (T * B * 2 * E * 8 * H + T * B * H2 * 8 * H + B * H2 * 2),
        transcendentals=T * 5 * B * H2 + 2 * B,
        bytes_accessed=(x_pair.size * 2 + packed["w_in"].size * 2
                        + packed["w_rec"].size * 2 + packed["b"].size * 4
                        + packed["wlin"].size * 4 + packed["blin"].size * 4
                        + B * 2 * 4),
    )

    vmem = pl.BlockSpec(memory_space=pltpu.MemorySpace.VMEM)
    return pl.pallas_call(
        bilstm_kernel,
        out_shape=jax.ShapeDtypeStruct((B, 2), jnp.float32),
        in_specs=[vmem] * 6,
        out_specs=vmem,
        cost_estimate=cost,
    )(x_pair, packed["w_in"], packed["b"], packed["w_rec"],
      packed["wlin"], packed["blin"])


def make_params(key, vocab_size, embedding_size, hidden_size):
    ks = jax.random.split(key, 9)
    scale = 0.1
    E, H = embedding_size, hidden_size
    return {
        "embedding": scale * jax.random.normal(ks[0], (vocab_size, E), jnp.float32),
        "wih_f": scale * jax.random.normal(ks[1], (E, 4 * H), jnp.float32),
        "whh_f": scale * jax.random.normal(ks[2], (H, 4 * H), jnp.float32),
        "b_f":   scale * jax.random.normal(ks[3], (1, 4 * H), jnp.float32),
        "wih_b": scale * jax.random.normal(ks[4], (E, 4 * H), jnp.float32),
        "whh_b": scale * jax.random.normal(ks[5], (H, 4 * H), jnp.float32),
        "b_b":   scale * jax.random.normal(ks[6], (1, 4 * H), jnp.float32),
        "wlin":  scale * jax.random.normal(ks[7], (2 * H, 2), jnp.float32),
        "blin":  scale * jax.random.normal(ks[8], (1, 2), jnp.float32),
    }


def reference_forward(tokens, params):
    """Pure-JAX f32 reference (same math as the PyTorch eval forward)."""
    emb = jnp.take(params["embedding"], tokens, axis=0)        # (B, T, E)
    B, T, E = emb.shape
    H = params["whh_f"].shape[0]

    def cell(x_t, h, c, wih, whh, b):
        z = x_t @ wih + h @ whh + b
        i = jax.nn.sigmoid(z[:, 0 * H:1 * H])
        f = jax.nn.sigmoid(z[:, 1 * H:2 * H])
        g = jnp.tanh(z[:, 2 * H:3 * H])
        o = jax.nn.sigmoid(z[:, 3 * H:4 * H])
        c = f * c + i * g
        h = o * jnp.tanh(c)
        return h, c

    h_f = c_f = h_b = c_b = jnp.zeros((B, H), jnp.float32)
    for t in range(T):
        h_f, c_f = cell(emb[:, t], h_f, c_f, params["wih_f"], params["whh_f"], params["b_f"])
        h_b, c_b = cell(emb[:, T - 1 - t], h_b, c_b, params["wih_b"], params["whh_b"], params["b_b"])
    hcat = jnp.concatenate([h_f, h_b], axis=-1)
    logits = hcat @ params["wlin"] + params["blin"]
    return jax.nn.log_softmax(logits, axis=-1)


if __name__ == "__main__":
    vocab_size, embedding_size, hidden_size = 50, 16, 32
    B, T = 2, 8

    key = jax.random.PRNGKey(0)
    k_params, k_tok = jax.random.split(key)
    params = make_params(k_params, vocab_size, embedding_size, hidden_size)
    tokens = jax.random.randint(k_tok, (B, T), 0, vocab_size, dtype=jnp.int32)

    packed = jax.block_until_ready(pack_params(params))        # one-time packing (init-time)

    out = bilstm_forward(tokens, packed)
    out = jax.block_until_ready(out)

    ref = reference_forward(tokens, params)
    assert out.shape == (B, 2)
    # bf16 matmul operands (f32 accumulation) -> slightly looser tolerance than pure f32.
    assert jnp.allclose(out, ref, atol=5e-3, rtol=5e-3), (out, ref)

    print("KERNEL_OK")
</pallas_src>

<mosaic_0001>
module attributes {stable_mosaic.version = 11 : i64} {
  func.func @bilstm_kernel(%arg0: memref<16x32xbf16, #tpu.memory_space<vmem>>, %arg1: memref<32x256xbf16, #tpu.memory_space<vmem>>, %arg2: memref<1x256xf32, #tpu.memory_space<vmem>>, %arg3: memref<64x256xbf16, #tpu.memory_space<vmem>>, %arg4: memref<64x2xf32, #tpu.memory_space<vmem>>, %arg5: memref<1x2xf32, #tpu.memory_space<vmem>>, %arg6: memref<2x2xf32, #tpu.memory_space<vmem>>) attributes {dimension_semantics = [], scalar_prefetch = 0 : i64, scratch_operands = 0 : i64, tpu.core_type = #tpu.core_type<tc>} {
    %c0 = arith.constant 0 : index
    %c0_0 = arith.constant 0 : index
    %0 = vector.load %arg0[%c0, %c0_0] : memref<16x32xbf16, #tpu.memory_space<vmem>>, vector<16x32xbf16>
    %c0_1 = arith.constant 0 : index
    %c0_2 = arith.constant 0 : index
    %1 = vector.load %arg1[%c0_1, %c0_2] : memref<32x256xbf16, #tpu.memory_space<vmem>>, vector<32x256xbf16>
    %cst = arith.constant dense<0.000000e+00> : vector<16x256xf32>
    %2 = tpu.matmul %0, %1, %cst {dimension_numbers = #tpu.dot_dimension_numbers<[1], [0], [0], [1], [0, 0, 1, 1], [], []>} : vector<16x32xbf16>, vector<32x256xbf16>, vector<16x256xf32> -> vector<16x256xf32>
    %c0_3 = arith.constant 0 : index
    %c0_4 = arith.constant 0 : index
    %3 = vector.load %arg2[%c0_3, %c0_4] : memref<1x256xf32, #tpu.memory_space<vmem>>, vector<1x256xf32>
    %4 = vector.broadcast %3 : vector<1x256xf32> to vector<16x256xf32>
    %5 = arith.addf %2, %4 : vector<16x256xf32>
    %c0_5 = arith.constant 0 : index
    %c0_6 = arith.constant 0 : index
    %6 = vector.load %arg3[%c0_5, %c0_6] : memref<64x256xbf16, #tpu.memory_space<vmem>>, vector<64x256xbf16>
    %cst_7 = arith.constant 0.000000e+00 : f32
    %7 = vector.broadcast %cst_7 : f32 to vector<2x64xf32>
    %cst_8 = arith.constant 0.000000e+00 : f32
    %8 = vector.broadcast %cst_8 : f32 to vector<2x64xf32>
    %9 = vector.extract_strided_slice %5 {offsets = [0, 0], sizes = [2, 256], strides = [1, 1]} : vector<16x256xf32> to vector<2x256xf32>
    %10 = arith.truncf %7 : vector<2x64xf32> to vector<2x64xbf16>
    %cst_9 = arith.constant dense<0.000000e+00> : vector<2x256xf32>
    %11 = tpu.matmul %10, %6, %cst_9 {dimension_numbers = #tpu.dot_dimension_numbers<[1], [0], [0], [1], [0, 0, 1, 1], [], []>} : vector<2x64xbf16>, vector<64x256xbf16>, vector<2x256xf32> -> vector<2x256xf32>
    %12 = arith.addf %9, %11 : vector<2x256xf32>
    %13 = vector.extract_strided_slice %12 {offsets = [0, 0], sizes = [2, 64], strides = [1, 1]} : vector<2x256xf32> to vector<2x64xf32>
    %14 = arith.negf %13 : vector<2x64xf32>
    %15 = math.exp %14 : vector<2x64xf32>
    %cst_10 = arith.constant 1.000000e+00 : f32
    %16 = vector.broadcast %cst_10 : f32 to vector<2x64xf32>
    %17 = arith.addf %16, %15 : vector<2x64xf32>
    %18 = arith.divf %16, %17 : vector<2x64xf32>
    %19 = vector.extract_strided_slice %12 {offsets = [0, 64], sizes = [2, 64], strides = [1, 1]} : vector<2x256xf32> to vector<2x64xf32>
    %20 = arith.negf %19 : vector<2x64xf32>
    %21 = math.exp %20 : vector<2x64xf32>
    %cst_11 = arith.constant 1.000000e+00 : f32
    %22 = vector.broadcast %cst_11 : f32 to vector<2x64xf32>
    %23 = arith.addf %22, %21 : vector<2x64xf32>
    %24 = arith.divf %22, %23 : vector<2x64xf32>
    %25 = vector.extract_strided_slice %12 {offsets = [0, 128], sizes = [2, 64], strides = [1, 1]} : vector<2x256xf32> to vector<2x64xf32>
    %26 = math.tanh %25 : vector<2x64xf32>
    %27 = vector.extract_strided_slice %12 {offsets = [0, 192], sizes = [2, 64], strides = [1, 1]} : vector<2x256xf32> to vector<2x64xf32>
    %28 = arith.negf %27 : vector<2x64xf32>
    %29 = math.exp %28 : vector<2x64xf32>
    %cst_12 = arith.constant 1.000000e+00 : f32
    %30 = vector.broadcast %cst_12 : f32 to vector<2x64xf32>
    %31 = arith.addf %30, %29 : vector<2x64xf32>
    %32 = arith.divf %30, %31 : vector<2x64xf32>
    %33 = arith.mulf %24, %8 : vector<2x64xf32>
    %34 = arith.mulf %18, %26 : vector<2x64xf32>
    %35 = arith.addf %33, %34 : vector<2x64xf32>
    %36 = math.tanh %35 : vector<2x64xf32>
    %37 = arith.mulf %32, %36 : vector<2x64xf32>
    %38 = vector.extract_strided_slice %5 {offsets = [2, 0], sizes = [2, 256], strides = [1, 1]} : vector<16x256xf32> to vector<2x256xf32>
    %39 = arith.truncf %37 : vector<2x64xf32> to vector<2x64xbf16>
    %cst_13 = arith.constant dense<0.000000e+00> : vector<2x256xf32>
    %40 = tpu.matmul %39, %6, %cst_13 {dimension_numbers = #tpu.dot_dimension_numbers<[1], [0], [0], [1], [0, 0, 1, 1], [], []>} : vector<2x64xbf16>, vector<64x256xbf16>, vector<2x256xf32> -> vector<2x256xf32>
    %41 = arith.addf %38, %40 : vector<2x256xf32>
    %42 = vector.extract_strided_slice %41 {offsets = [0, 0], sizes = [2, 64], strides = [1, 1]} : vector<2x256xf32> to vector<2x64xf32>
    %43 = arith.negf %42 : vector<2x64xf32>
    %44 = math.exp %43 : vector<2x64xf32>
    %cst_14 = arith.constant 1.000000e+00 : f32
    %45 = vector.broadcast %cst_14 : f32 to vector<2x64xf32>
    %46 = arith.addf %45, %44 : vector<2x64xf32>
    %47 = arith.divf %45, %46 : vector<2x64xf32>
    %48 = vector.extract_strided_slice %41 {offsets = [0, 64], sizes = [2, 64], strides = [1, 1]} : vector<2x256xf32> to vector<2x64xf32>
    %49 = arith.negf %48 : vector<2x64xf32>
    %50 = math.exp %49 : vector<2x64xf32>
    %cst_15 = arith.constant 1.000000e+00 : f32
    %51 = vector.broadcast %cst_15 : f32 to vector<2x64xf32>
    %52 = arith.addf %51, %50 : vector<2x64xf32>
    %53 = arith.divf %51, %52 : vector<2x64xf32>
    %54 = vector.extract_strided_slice %41 {offsets = [0, 128], sizes = [2, 64], strides = [1, 1]} : vector<2x256xf32> to vector<2x64xf32>
    %55 = math.tanh %54 : vector<2x64xf32>
    %56 = vector.extract_strided_slice %41 {offsets = [0, 192], sizes = [2, 64], strides = [1, 1]} : vector<2x256xf32> to vector<2x64xf32>
    %57 = arith.negf %56 : vector<2x64xf32>
    %58 = math.exp %57 : vector<2x64xf32>
    %cst_16 = arith.constant 1.000000e+00 : f32
    %59 = vector.broadcast %cst_16 : f32 to vector<2x64xf32>
    %60 = arith.addf %59, %58 : vector<2x64xf32>
    %61 = arith.divf %59, %60 : vector<2x64xf32>
    %62 = arith.mulf %53, %35 : vector<2x64xf32>
    %63 = arith.mulf %47, %55 : vector<2x64xf32>
    %64 = arith.addf %62, %63 : vector<2x64xf32>
    %65 = math.tanh %64 : vector<2x64xf32>
    %66 = arith.mulf %61, %65 : vector<2x64xf32>
    %67 = vector.extract_strided_slice %5 {offsets = [4, 0], sizes = [2, 256], strides = [1, 1]} : vector<16x256xf32> to vector<2x256xf32>
    %68 = arith.truncf %66 : vector<2x64xf32> to vector<2x64xbf16>
    %cst_17 = arith.constant dense<0.000000e+00> : vector<2x256xf32>
    %69 = tpu.matmul %68, %6, %cst_17 {dimension_numbers = #tpu.dot_dimension_numbers<[1], [0], [0], [1], [0, 0, 1, 1], [], []>} : vector<2x64xbf16>, vector<64x256xbf16>, vector<2x256xf32> -> vector<2x256xf32>
    %70 = arith.addf %67, %69 : vector<2x256xf32>
    %71 = vector.extract_strided_slice %70 {offsets = [0, 0], sizes = [2, 64], strides = [1, 1]} : vector<2x256xf32> to vector<2x64xf32>
    %72 = arith.negf %71 : vector<2x64xf32>
    %73 = math.exp %72 : vector<2x64xf32>
    %cst_18 = arith.constant 1.000000e+00 : f32
    %74 = vector.broadcast %cst_18 : f32 to vector<2x64xf32>
    %75 = arith.addf %74, %73 : vector<2x64xf32>
    %76 = arith.divf %74, %75 : vector<2x64xf32>
    %77 = vector.extract_strided_slice %70 {offsets = [0, 64], sizes = [2, 64], strides = [1, 1]} : vector<2x256xf32> to vector<2x64xf32>
    %78 = arith.negf %77 : vector<2x64xf32>
    %79 = math.exp %78 : vector<2x64xf32>
    %cst_19 = arith.constant 1.000000e+00 : f32
    %80 = vector.broadcast %cst_19 : f32 to vector<2x64xf32>
    %81 = arith.addf %80, %79 : vector<2x64xf32>
    %82 = arith.divf %80, %81 : vector<2x64xf32>
    %83 = vector.extract_strided_slice %70 {offsets = [0, 128], sizes = [2, 64], strides = [1, 1]} : vector<2x256xf32> to vector<2x64xf32>
    %84 = math.tanh %83 : vector<2x64xf32>
    %85 = vector.extract_strided_slice %70 {offsets = [0, 192], sizes = [2, 64], strides = [1, 1]} : vector<2x256xf32> to vector<2x64xf32>
    %86 = arith.negf %85 : vector<2x64xf32>
    %87 = math.exp %86 : vector<2x64xf32>
    %cst_20 = arith.constant 1.000000e+00 : f32
    %88 = vector.broadcast %cst_20 : f32 to vector<2x64xf32>
    %89 = arith.addf %88, %87 : vector<2x64xf32>
    %90 = arith.divf %88, %89 : vector<2x64xf32>
    %91 = arith.mulf %82, %64 : vector<2x64xf32>
    %92 = arith.mulf %76, %84 : vector<2x64xf32>
    %93 = arith.addf %91, %92 : vector<2x64xf32>
    %94 = math.tanh %93 : vector<2x64xf32>
    %95 = arith.mulf %90, %94 : vector<2x64xf32>
    %96 = vector.extract_strided_slice %5 {offsets = [6, 0], sizes = [2, 256], strides = [1, 1]} : vector<16x256xf32> to vector<2x256xf32>
    %97 = arith.truncf %95 : vector<2x64xf32> to vector<2x64xbf16>
    %cst_21 = arith.constant dense<0.000000e+00> : vector<2x256xf32>
    %98 = tpu.matmul %97, %6, %cst_21 {dimension_numbers = #tpu.dot_dimension_numbers<[1], [0], [0], [1], [0, 0, 1, 1], [], []>} : vector<2x64xbf16>, vector<64x256xbf16>, vector<2x256xf32> -> vector<2x256xf32>
    %99 = arith.addf %96, %98 : vector<2x256xf32>
    %100 = vector.extract_strided_slice %99 {offsets = [0, 0], sizes = [2, 64], strides = [1, 1]} : vector<2x256xf32> to vector<2x64xf32>
    %101 = arith.negf %100 : vector<2x64xf32>
    %102 = math.exp %101 : vector<2x64xf32>
    %cst_22 = arith.constant 1.000000e+00 : f32
    %103 = vector.broadcast %cst_22 : f32 to vector<2x64xf32>
    %104 = arith.addf %103, %102 : vector<2x64xf32>
    %105 = arith.divf %103, %104 : vector<2x64xf32>
    %106 = vector.extract_strided_slice %99 {offsets = [0, 64], sizes = [2, 64], strides = [1, 1]} : vector<2x256xf32> to vector<2x64xf32>
    %107 = arith.negf %106 : vector<2x64xf32>
    %108 = math.exp %107 : vector<2x64xf32>
    %cst_23 = arith.constant 1.000000e+00 : f32
    %109 = vector.broadcast %cst_23 : f32 to vector<2x64xf32>
    %110 = arith.addf %109, %108 : vector<2x64xf32>
    %111 = arith.divf %109, %110 : vector<2x64xf32>
    %112 = vector.extract_strided_slice %99 {offsets = [0, 128], sizes = [2, 64], strides = [1, 1]} : vector<2x256xf32> to vector<2x64xf32>
    %113 = math.tanh %112 : vector<2x64xf32>
    %114 = vector.extract_strided_slice %99 {offsets = [0, 192], sizes = [2, 64], strides = [1, 1]} : vector<2x256xf32> to vector<2x64xf32>
    %115 = arith.negf %114 : vector<2x64xf32>
    %116 = math.exp %115 : vector<2x64xf32>
    %cst_24 = arith.constant 1.000000e+00 : f32
    %117 = vector.broadcast %cst_24 : f32 to vector<2x64xf32>
    %118 = arith.addf %117, %116 : vector<2x64xf32>
    %119 = arith.divf %117, %118 : vector<2x64xf32>
    %120 = arith.mulf %111, %93 : vector<2x64xf32>
    %121 = arith.mulf %105, %113 : vector<2x64xf32>
    %122 = arith.addf %120, %121 : vector<2x64xf32>
    %123 = math.tanh %122 : vector<2x64xf32>
    %124 = arith.mulf %119, %123 : vector<2x64xf32>
    %125 = vector.extract_strided_slice %5 {offsets = [8, 0], sizes = [2, 256], strides = [1, 1]} : vector<16x256xf32> to vector<2x256xf32>
    %126 = arith.truncf %124 : vector<2x64xf32> to vector<2x64xbf16>
    %cst_25 = arith.constant dense<0.000000e+00> : vector<2x256xf32>
    %127 = tpu.matmul %126, %6, %cst_25 {dimension_numbers = #tpu.dot_dimension_numbers<[1], [0], [0], [1], [0, 0, 1, 1], [], []>} : vector<2x64xbf16>, vector<64x256xbf16>, vector<2x256xf32> -> vector<2x256xf32>
    %128 = arith.addf %125, %127 : vector<2x256xf32>
    %129 = vector.extract_strided_slice %128 {offsets = [0, 0], sizes = [2, 64], strides = [1, 1]} : vector<2x256xf32> to vector<2x64xf32>
    %130 = arith.negf %129 : vector<2x64xf32>
    %131 = math.exp %130 : vector<2x64xf32>
    %cst_26 = arith.constant 1.000000e+00 : f32
    %132 = vector.broadcast %cst_26 : f32 to vector<2x64xf32>
    %133 = arith.addf %132, %131 : vector<2x64xf32>
    %134 = arith.divf %132, %133 : vector<2x64xf32>
    %135 = vector.extract_strided_slice %128 {offsets = [0, 64], sizes = [2, 64], strides = [1, 1]} : vector<2x256xf32> to vector<2x64xf32>
    %136 = arith.negf %135 : vector<2x64xf32>
    %137 = math.exp %136 : vector<2x64xf32>
    %cst_27 = arith.constant 1.000000e+00 : f32
    %138 = vector.broadcast %cst_27 : f32 to vector<2x64xf32>
    %139 = arith.addf %138, %137 : vector<2x64xf32>
    %140 = arith.divf %138, %139 : vector<2x64xf32>
    %141 = vector.extract_strided_slice %128 {offsets = [0, 128], sizes = [2, 64], strides = [1, 1]} : vector<2x256xf32> to vector<2x64xf32>
    %142 = math.tanh %141 : vector<2x64xf32>
    %143 = vector.extract_strided_slice %128 {offsets = [0, 192], sizes = [2, 64], strides = [1, 1]} : vector<2x256xf32> to vector<2x64xf32>
    %144 = arith.negf %143 : vector<2x64xf32>
    %145 = math.exp %144 : vector<2x64xf32>
    %cst_28 = arith.constant 1.000000e+00 : f32
    %146 = vector.broadcast %cst_28 : f32 to vector<2x64xf32>
    %147 = arith.addf %146, %145 : vector<2x64xf32>
    %148 = arith.divf %146, %147 : vector<2x64xf32>
    %149 = arith.mulf %140, %122 : vector<2x64xf32>
    %150 = arith.mulf %134, %142 : vector<2x64xf32>
    %151 = arith.addf %149, %150 : vector<2x64xf32>
    %152 = math.tanh %151 : vector<2x64xf32>
    %153 = arith.mulf %148, %152 : vector<2x64xf32>
    %154 = vector.extract_strided_slice %5 {offsets = [10, 0], sizes = [2, 256], strides = [1, 1]} : vector<16x256xf32> to vector<2x256xf32>
    %155 = arith.truncf %153 : vector<2x64xf32> to vector<2x64xbf16>
    %cst_29 = arith.constant dense<0.000000e+00> : vector<2x256xf32>
    %156 = tpu.matmul %155, %6, %cst_29 {dimension_numbers = #tpu.dot_dimension_numbers<[1], [0], [0], [1], [0, 0, 1, 1], [], []>} : vector<2x64xbf16>, vector<64x256xbf16>, vector<2x256xf32> -> vector<2x256xf32>
    %157 = arith.addf %154, %156 : vector<2x256xf32>
    %158 = vector.extract_strided_slice %157 {offsets = [0, 0], sizes = [2, 64], strides = [1, 1]} : vector<2x256xf32> to vector<2x64xf32>
    %159 = arith.negf %158 : vector<2x64xf32>
    %160 = math.exp %159 : vector<2x64xf32>
    %cst_30 = arith.constant 1.000000e+00 : f32
    %161 = vector.broadcast %cst_30 : f32 to vector<2x64xf32>
    %162 = arith.addf %161, %160 : vector<2x64xf32>
    %163 = arith.divf %161, %162 : vector<2x64xf32>
    %164 = vector.extract_strided_slice %157 {offsets = [0, 64], sizes = [2, 64], strides = [1, 1]} : vector<2x256xf32> to vector<2x64xf32>
    %165 = arith.negf %164 : vector<2x64xf32>
    %166 = math.exp %165 : vector<2x64xf32>
    %cst_31 = arith.constant 1.000000e+00 : f32
    %167 = vector.broadcast %cst_31 : f32 to vector<2x64xf32>
    %168 = arith.addf %167, %166 : vector<2x64xf32>
    %169 = arith.divf %167, %168 : vector<2x64xf32>
    %170 = vector.extract_strided_slice %157 {offsets = [0, 128], sizes = [2, 64], strides = [1, 1]} : vector<2x256xf32> to vector<2x64xf32>
    %171 = math.tanh %170 : vector<2x64xf32>
    %172 = vector.extract_strided_slice %157 {offsets = [0, 192], sizes = [2, 64], strides = [1, 1]} : vector<2x256xf32> to vector<2x64xf32>
    %173 = arith.negf %172 : vector<2x64xf32>
    %174 = math.exp %173 : vector<2x64xf32>
    %cst_32 = arith.constant 1.000000e+00 : f32
    %175 = vector.broadcast %cst_32 : f32 to vector<2x64xf32>
    %176 = arith.addf %175, %174 : vector<2x64xf32>
    %177 = arith.divf %175, %176 : vector<2x64xf32>
    %178 = arith.mulf %169, %151 : vector<2x64xf32>
    %179 = arith.mulf %163, %171 : vector<2x64xf32>
    %180 = arith.addf %178, %179 : vector<2x64xf32>
    %181 = math.tanh %180 : vector<2x64xf32>
    %182 = arith.mulf %177, %181 : vector<2x64xf32>
    %183 = vector.extract_strided_slice %5 {offsets = [12, 0], sizes = [2, 256], strides = [1, 1]} : vector<16x256xf32> to vector<2x256xf32>
    %184 = arith.truncf %182 : vector<2x64xf32> to vector<2x64xbf16>
    %cst_33 = arith.constant dense<0.000000e+00> : vector<2x256xf32>
    %185 = tpu.matmul %184, %6, %cst_33 {dimension_numbers = #tpu.dot_dimension_numbers<[1], [0], [0], [1], [0, 0, 1, 1], [], []>} : vector<2x64xbf16>, vector<64x256xbf16>, vector<2x256xf32> -> vector<2x256xf32>
    %186 = arith.addf %183, %185 : vector<2x256xf32>
    %187 = vector.extract_strided_slice %186 {offsets = [0, 0], sizes = [2, 64], strides = [1, 1]} : vector<2x256xf32> to vector<2x64xf32>
    %188 = arith.negf %187 : vector<2x64xf32>
    %189 = math.exp %188 : vector<2x64xf32>
    %cst_34 = arith.constant 1.000000e+00 : f32
    %190 = vector.broadcast %cst_34 : f32 to vector<2x64xf32>
    %191 = arith.addf %190, %189 : vector<2x64xf32>
    %192 = arith.divf %190, %191 : vector<2x64xf32>
    %193 = vector.extract_strided_slice %186 {offsets = [0, 64], sizes = [2, 64], strides = [1, 1]} : vector<2x256xf32> to vector<2x64xf32>
    %194 = arith.negf %193 : vector<2x64xf32>
    %195 = math.exp %194 : vector<2x64xf32>
    %cst_35 = arith.constant 1.000000e+00 : f32
    %196 = vector.broadcast %cst_35 : f32 to vector<2x64xf32>
    %197 = arith.addf %196, %195 : vector<2x64xf32>
    %198 = arith.divf %196, %197 : vector<2x64xf32>
    %199 = vector.extract_strided_slice %186 {offsets = [0, 128], sizes = [2, 64], strides = [1, 1]} : vector<2x256xf32> to vector<2x64xf32>
    %200 = math.tanh %199 : vector<2x64xf32>
    %201 = vector.extract_strided_slice %186 {offsets = [0, 192], sizes = [2, 64], strides = [1, 1]} : vector<2x256xf32> to vector<2x64xf32>
    %202 = arith.negf %201 : vector<2x64xf32>
    %203 = math.exp %202 : vector<2x64xf32>
    %cst_36 = arith.constant 1.000000e+00 : f32
    %204 = vector.broadcast %cst_36 : f32 to vector<2x64xf32>
    %205 = arith.addf %204, %203 : vector<2x64xf32>
    %206 = arith.divf %204, %205 : vector<2x64xf32>
    %207 = arith.mulf %198, %180 : vector<2x64xf32>
    %208 = arith.mulf %192, %200 : vector<2x64xf32>
    %209 = arith.addf %207, %208 : vector<2x64xf32>
    %210 = math.tanh %209 : vector<2x64xf32>
    %211 = arith.mulf %206, %210 : vector<2x64xf32>
    %212 = vector.extract_strided_slice %5 {offsets = [14, 0], sizes = [2, 256], strides = [1, 1]} : vector<16x256xf32> to vector<2x256xf32>
    %213 = arith.truncf %211 : vector<2x64xf32> to vector<2x64xbf16>
    %cst_37 = arith.constant dense<0.000000e+00> : vector<2x256xf32>
    %214 = tpu.matmul %213, %6, %cst_37 {dimension_numbers = #tpu.dot_dimension_numbers<[1], [0], [0], [1], [0, 0, 1, 1], [], []>} : vector<2x64xbf16>, vector<64x256xbf16>, vector<2x256xf32> -> vector<2x256xf32>
    %215 = arith.addf %212, %214 : vector<2x256xf32>
    %216 = vector.extract_strided_slice %215 {offsets = [0, 0], sizes = [2, 64], strides = [1, 1]} : vector<2x256xf32> to vector<2x64xf32>
    %217 = arith.negf %216 : vector<2x64xf32>
    %218 = math.exp %217 : vector<2x64xf32>
    %cst_38 = arith.constant 1.000000e+00 : f32
    %219 = vector.broadcast %cst_38 : f32 to vector<2x64xf32>
    %220 = arith.addf %219, %218 : vector<2x64xf32>
    %221 = arith.divf %219, %220 : vector<2x64xf32>
    %222 = vector.extract_strided_slice %215 {offsets = [0, 64], sizes = [2, 64], strides = [1, 1]} : vector<2x256xf32> to vector<2x64xf32>
    %223 = arith.negf %222 : vector<2x64xf32>
    %224 = math.exp %223 : vector<2x64xf32>
    %cst_39 = arith.constant 1.000000e+00 : f32
    %225 = vector.broadcast %cst_39 : f32 to vector<2x64xf32>
    %226 = arith.addf %225, %224 : vector<2x64xf32>
    %227 = arith.divf %225, %226 : vector<2x64xf32>
    %228 = vector.extract_strided_slice %215 {offsets = [0, 128], sizes = [2, 64], strides = [1, 1]} : vector<2x256xf32> to vector<2x64xf32>
    %229 = math.tanh %228 : vector<2x64xf32>
    %230 = vector.extract_strided_slice %215 {offsets = [0, 192], sizes = [2, 64], strides = [1, 1]} : vector<2x256xf32> to vector<2x64xf32>
    %231 = arith.negf %230 : vector<2x64xf32>
    %232 = math.exp %231 : vector<2x64xf32>
    %cst_40 = arith.constant 1.000000e+00 : f32
    %233 = vector.broadcast %cst_40 : f32 to vector<2x64xf32>
    %234 = arith.addf %233, %232 : vector<2x64xf32>
    %235 = arith.divf %233, %234 : vector<2x64xf32>
    %236 = arith.mulf %227, %209 : vector<2x64xf32>
    %237 = arith.mulf %221, %229 : vector<2x64xf32>
    %238 = arith.addf %236, %237 : vector<2x64xf32>
    %239 = math.tanh %238 : vector<2x64xf32>
    %240 = arith.mulf %235, %239 : vector<2x64xf32>
    %c0_41 = arith.constant 0 : index
    %c0_42 = arith.constant 0 : index
    %241 = vector.load %arg4[%c0_41, %c0_42] : memref<64x2xf32, #tpu.memory_space<vmem>>, vector<64x2xf32>
    %cst_43 = arith.constant dense<0.000000e+00> : vector<2x2xf32>
    %242 = tpu.matmul %240, %241, %cst_43 {dimension_numbers = #tpu.dot_dimension_numbers<[1], [0], [0], [1], [0, 0, 1, 1], [], []>} : vector<2x64xf32>, vector<64x2xf32>, vector<2x2xf32> -> vector<2x2xf32>
    %c0_44 = arith.constant 0 : index
    %c0_45 = arith.constant 0 : index
    %243 = vector.load %arg5[%c0_44, %c0_45] : memref<1x2xf32, #tpu.memory_space<vmem>>, vector<1x2xf32>
    %244 = vector.broadcast %243 : vector<1x2xf32> to vector<2x2xf32>
    %245 = arith.addf %242, %244 : vector<2x2xf32>
    %cst_46 = arith.constant dense<0xFF800000> : vector<2xf32>
    %246 = vector.multi_reduction <maximumf>, %245, %cst_46 [1] : vector<2x2xf32> to vector<2xf32>
    %247 = vector.shape_cast %246 : vector<2xf32> to vector<2x1xf32>
    %248 = vector.broadcast %247 : vector<2x1xf32> to vector<2x2xf32>
    %249 = arith.subf %245, %248 : vector<2x2xf32>
    %250 = math.exp %249 : vector<2x2xf32>
    %cst_47 = arith.constant dense<0.000000e+00> : vector<2xf32>
    %251 = vector.multi_reduction <add>, %250, %cst_47 [1] : vector<2x2xf32> to vector<2xf32>
    %252 = vector.shape_cast %251 : vector<2xf32> to vector<2x1xf32>
    %253 = math.log %252 : vector<2x1xf32>
    %254 = vector.broadcast %253 : vector<2x1xf32> to vector<2x2xf32>
    %255 = arith.subf %249, %254 : vector<2x2xf32>
    %c0_48 = arith.constant 0 : index
    %c0_49 = arith.constant 0 : index
    %256 = vector.load %arg6[%c0_48, %c0_49] : memref<2x2xf32, #tpu.memory_space<vmem>>, vector<2x2xf32>
    tpu.vector_store %arg6[%c0_48, %c0_49], %255 {strides = array<i32>} : memref<2x2xf32, #tpu.memory_space<vmem>>, vector<2x2xf32>,
    return
  }
}

</mosaic_0001>

<bundles_post_ra>
// kernel: bilstm_forward.1
= control target key start
LH: loop header
LB: loop body
LE: loop exit
PB: predicated region body
PF: predicated region fallthrough
CT: control target
= control target key end

     0   :  { %v1145_v2 = vmov 0   ;;  %vm68_vm0 = vcmask 261120   ;;  %s1408_s0 = inlined_call_operand.vmem [shape: bf16[16,32], index: 0, kind: input, shape index: {}]   ;;  %s1409_s1 = inlined_call_operand.vmem [shape: bf16[32,256], index: 1, kind: input, shape index: {}]   ;;  %s1410_s2 = inlined_call_operand.vmem [shape: f32[1,256], index: 2, kind: input, shape index: {}]   ;;  %s1411_s3 = inlined_call_operand.vmem [shape: bf16[64,256], index: 3, kind: input, shape index: {}]   ;;  %s1412_s4 = inlined_call_operand.vmem [shape: f32[64,2], index: 4, kind: input, shape index: {}]   ;;  %s1413_s5 = inlined_call_operand.vmem [shape: f32[1,2], index: 5, kind: input, shape index: {}]   ;;  %s1414_s6 = inlined_call_operand.hbm [shape: f32[2,2], index: 6, kind: output, shape index: {}]  }
   0x1   :  { %v1189_v0 = vld [vmem:[%s1411_s3 + $0x4] ss:$8 sps:$4 sm:$0xff]   ;;  %v1194_v1 = vld [vmem:[%s1411_s3] ss:$8 sps:$4 sm:$0xff]   ;;  %104 = vmatprep.mubr.bf16.mxu0 %v1145_v2  ;;  %199 = vmatprep.mubr.bf16.mxu1 %v1145_v2  ;;  %v1209_v5 = vld [vmem:[%s1411_s3 + $0x14] ss:$8 sps:$4 sm:$0xff]  }
   0x2   :  { %167 = vmatprep.subr.bf16.mxu1 %v1189_v0  ;;  %v1005_v3 = vld [vmem:[%s1409_s1 + $0x4] ss:$8 sps:$4 sm:$0xff]   ;;  %v1007_v4 = vld [vmem:[%s1409_s1] ss:$8 sps:$4 sm:$0xff]   ;;  %v1214_v6 = vld [vmem:[%s1411_s3 + $0x10] ss:$8 sps:$4 sm:$0xff]  }
   0x3   :  { %168 = vmatpush1.bf16.msra.mxu1 %v1194_v1  ;;  %72 = vmatprep.subr.bf16.mxu0 %v1005_v3  ;;  %v1011_v7 = vld [vmem:[%s1409_s1 + $0x14] ss:$8 sps:$4 sm:$0xff]   ;;  %v1013_v8 = vld [vmem:[%s1409_s1 + $0x10] ss:$8 sps:$4 sm:$0xff]   ;;  %v1226_v9 = vld [vmem:[%s1411_s3 + $0x24] ss:$8 sps:$4 sm:$0xff]  }
   0x4   :  { %73 = vmatpush1.bf16.msra.mxu0 %v1007_v4  ;;  %169 = vmatprep.subr.bf16.mxu1 %v1209_v5  ;;  %v1232_v10 = vld [vmem:[%s1411_s3 + $0x20] ss:$8 sps:$4 sm:$0xff]   ;;  %v1241_v12 = vld [vmem:[%s1411_s3 + $0x34] ss:$8 sps:$4 sm:$0xff]  }
   0x5   :  { %74 = vmatprep.subr.bf16.mxu0 %v1011_v7  ;;  %v1017_v11 = vld [vmem:[%s1408_s0] sm:$0xff]  }
   0x7   :  { %170 = vmatpush1.bf16.msra.mxu1 %v1214_v6 }
   0x8   :  { %171 = vmatprep.subr.bf16.mxu1 %v1226_v9  ;;  %75 = vmatpush1.bf16.msra.mxu0 %v1013_v8 }
   0x9   :  { %11 = vsyncpa [#allocation3], 0  ;;  %239 = vmatprep.subr.bf16.mxu0 %v1189_v0  ;;  %v1248_v13 = vld [vmem:[%s1411_s3 + $0x30] ss:$8 sps:$4 sm:$0xff]   ;;  %v33_v14 = vlaneseq  ;;  %v31_v17 = vld [vmem:[%s1410_s2] sm:$0x3] }
   0xa   :  { %s1146_s2 = smov 64   ;;  %vm163_vm1 = vcmask 523264   ;;  %vm1148_vm2 = vmmov 0   ;;  %vm889_vm3 = vcmask 9216   ;;  %s1150_s15 = smov [#allocation2]  }
   0xb   :  { %172 = vmatpush1.bf16.msra.mxu1 %v1232_v10  ;;  %922 = vmatmul.mubr.msk.bf16.vlgmr.msra.gmra.mrb[0].mxu0 %vm68_vm0, %v1017_v11  ;;  %v34_v15 = vshrl.u32 %v33_v14, 7 }
   0xc   :  { %173 = vmatprep.subr.bf16.mxu1 %v1241_v12  ;;  %240 = vmatpush1.bf16.msra.mxu0 %v1194_v1 }
   0xd   :  { %271 = vmatprep.mubr.bf16.mxu0 %v1145_v2  ;;  %241 = vmatprep.subr.bf16.mxu0 %v1209_v5  ;;  %v35_v16 = vsub.s32 0, %v34_v15  ;;  %v39_v18 = vsub.s32 1, %v34_v15 }
   0xf   :  { %174 = vmatpush1.bf16.msra.mxu1 %v1248_v13  ;;  %v36_v19 = vrot.slane %v31_v17, %v35_v16  ;;  %v40_v21 = vrot.slane %v31_v17, %v39_v18 }
  0x10   :  { %321 = vmatprep.subr.bf16.mxu1 %v1189_v0  ;;  %242 = vmatpush1.bf16.msra.mxu0 %v1214_v6 }
  0x11   :  { %243 = vmatprep.subr.bf16.mxu0 %v1226_v9 }
  0x12   :  { %200 = vmatmul.mubr.bf16.vlgmr.msra.gmra.mrb[0].mxu1 %v1145_v2 }
  0x13   :  { %322 = vmatpush1.bf16.msra.mxu1 %v1194_v1  ;;  %353 = vmatprep.mubr.bf16.mxu1 %v1145_v2 }
  0x14   :  { %323 = vmatprep.subr.bf16.mxu1 %v1209_v5  ;;  %244 = vmatpush1.bf16.msra.mxu0 %v1232_v10 }
  0x15   :  { %245 = vmatprep.subr.bf16.mxu0 %v1241_v12 }
  0x17   :  { %324 = vmatpush1.bf16.msra.mxu1 %v1214_v6 }
  0x18   :  { %325 = vmatprep.subr.bf16.mxu1 %v1226_v9  ;;  %246 = vmatpush1.bf16.msra.mxu0 %v1248_v13 }
  0x19   :  { %403 = vmatprep.subr.bf16.mxu0 %v1189_v0 }
  0x1b   :  { %326 = vmatpush1.bf16.msra.mxu1 %v1232_v10 }
  0x1c   :  { %327 = vmatprep.subr.bf16.mxu1 %v1241_v12 }
  0x1f   :  { %328 = vmatpush1.bf16.msra.mxu1 %v1248_v13 }
  0x20   :  { %485 = vmatprep.subr.bf16.mxu1 %v1189_v0 }
  0xde   :  { %v106_v20 = vpop.f32.mrb[0].mxu0 }
  0xdf   :  { %v108_v22 = vpop.f32.mrb[1].mxu0  ;;  %v1275_v24 = vadd.f32 %v106_v20, %v36_v19 }
  0xe0   :  { %v110_v23 = vpop.f32.mrb[2].mxu0  ;;  %v1282_v34 = vadd.f32 %v108_v22, %v40_v21 }
  0xe1   :  { %v1277_v25 = vadd.f32 %v110_v23, %v36_v19  ;;  %v112_v26 = vpop.f32.mrb[3].mxu0 }
  0xe2   :  { %v1279_v27 = vadd.f32 %v112_v26, %v40_v21 }
  0xe5   :  { %v201_v28 = vpop.f32.mrb[0].mxu1 }
  0xe6   :  { %v208_v29 = vadd.f32 %v201_v28, %v1275_v24  ;;  %v203_v30 = vpop.f32.mrb[1].mxu1 }
  0xe7   :  { %v205_v31 = vpop.f32.mrb[2].mxu1  ;;  %v209_v35 = vadd.f32 %v203_v30, %v1282_v34 }
  0xe8   :  { %v931_v32 = vmul.f32 -1.442695, %v208_v29  ;;  %v206_v33 = vpop.f32.mrb[3].mxu1 }
  0xe9   :  { %v932_v41 = vmul.f32 -1.442695, %v209_v35 }
  0xea   :  { %1021 = vpow2.f32 %v931_v32 }
  0xeb   :  { %1023 = vtanh.f32 %v209_v35 }
  0xf4   :  { %v1022_v36 = vpop.eup %1021 }
  0xf5   :  { %v213_v37 = vadd.f32 1.0, %v1022_v36  ;;  %v1024_v38 = vpop.eup %1023 }
  0xf7   :  { %1025 = vrcp.f32 %v213_v37 }
  0xf8   :  { %1027 = vpow2.f32 %v932_v41 }
 0x101   :  { %v1026_v39 = vpop.eup %1025 }
 0x102   :  { %v224_v40 = vmul.f32 %v1026_v39, %v1024_v38  ;;  %v1028_v42 = vpop.eup %1027  ;;  %v223_v44 = vmul.f32 0.0, %v1026_v39 }
 0x103   :  { %v220_v43 = vadd.f32 1.0, %v1028_v42 }
 0x104   :  { %226 = vrot.lane.b32.xlu0 %v224_v40, %s1146_s2 }
 0x105   :  { %1029 = vrcp.f32 %v220_v43 }
 0x10f   :  { %v1030_v47 = vpop.eup %1029 }
 0x176   :  { %v227_v45 = vpop.permute.xlu0 %226 }
 0x177   :  { %v229_v46 = vadd.f32 %v227_v45, %v223_v44 }
 0x179   :  { %1031 = vtanh.f32 %v229_v46  ;;  %v302_v3 = vrot.slane %v229_v46, 6 }
 0x183   :  { %v1032_v48 = vpop.eup %1031 }
 0x184   :  { %v231_v49 = vmul.f32 %v1032_v48, %v1030_v47 }
 0x186   :  { %v232_v50 = vpack.c.bf16 %v231_v49, %v231_v49 }
 0x188   :  { %234 = vrot.lane.b32.xlu0 %v232_v50, %s1146_s2 }
 0x1fa   :  { %v235_v51 = vpop.permute.xlu0 %234 }
 0x1fb   :  { %933 = vmatmul.mubr.msk.bf16.vlgmr.msra.gmra.mrb[4].mxu0 %vm163_vm1, %v235_v51 }
 0x1fc   :  { %404 = vmatpush1.bf16.msra.mxu0 %v1194_v1  ;;  %435 = vmatprep.mubr.bf16.mxu0 %v1145_v2 }
 0x1fd   :  { %405 = vmatprep.subr.bf16.mxu0 %v1209_v5 }
 0x200   :  { %406 = vmatpush1.bf16.msra.mxu0 %v1214_v6 }
 0x201   :  { %407 = vmatprep.subr.bf16.mxu0 %v1226_v9 }
 0x204   :  { %408 = vmatpush1.bf16.msra.mxu0 %v1232_v10 }
 0x205   :  { %409 = vmatprep.subr.bf16.mxu0 %v1241_v12 }
 0x208   :  { %410 = vmatpush1.bf16.msra.mxu0 %v1248_v13 }
 0x209   :  { %560 = vmatprep.subr.bf16.mxu0 %v1189_v0 }
 0x2ce   :  { %v273_v52 = vpop.f32.mrb[4].mxu0 }
 0x2cf   :  { %v282_v53 = vrot.slane %v273_v52, 6  ;;  %v275_v54 = vpop.f32.mrb[5].mxu0 }
 0x2d0   :  { %v277_v55 = vpop.f32.mrb[6].mxu0  ;;  %v283_v59 = vrot.slane %v275_v54, 6 }
 0x2d1   :  { %v286_v56 = vadd.f32 %v282_v53, %v1275_v24  ;;  %v278_v57 = vpop.f32.mrb[7].mxu0 }
 0x2d2   :  { %v287_v60 = vadd.f32 %v283_v59, %v1282_v34 }
 0x2d3   :  { %v934_v58 = vmul.f32 -1.442695, %v286_v56 }
 0x2d4   :  { %v935_v11 = vmul.f32 -1.442695, %v287_v60 }
 0x2d5   :  { %1033 = vpow2.f32 %v934_v58 }
 0x2d6   :  { %1035 = vtanh.f32 %v287_v60 }
 0x2df   :  { %v1034_v61 = vpop.eup %1033 }
 0x2e0   :  { %v291_v62 = vadd.f32 1.0, %v1034_v61  ;;  %v1036_v63 = vpop.eup %1035 }
 0x2e2   :  { %1037 = vrcp.f32 %v291_v62 }
 0x2e3   :  { %1039 = vpow2.f32 %v935_v11 }
 0x2ec   :  { %v1038_v4 = vpop.eup %1037 }
 0x2ed   :  { %v305_v7 = vmul.f32 %v1038_v4, %v1036_v63  ;;  %v304_v8 = vmul.f32 %v1038_v4, %v302_v3  ;;  %v1040_v14 = vpop.eup %1039 }
 0x2ee   :  { %v298_v15 = vadd.f32 1.0, %v1040_v14 }
 0x2ef   :  { %307 = vrot.lane.b32.xlu1 %v305_v7, %s1146_s2 }
 0x2f0   :  { %1041 = vrcp.f32 %v298_v15 }
 0x2fa   :  { %v1042_v18 = vpop.eup %1041 }
 0x361   :  { %v308_v16 = vpop.permute.xlu1 %307 }
 0x362   :  { %v310_v17 = vadd.f32 %v308_v16, %v304_v8 }
 0x364   :  { %1043 = vtanh.f32 %v310_v17  ;;  %v384_v40 = vrot.slane %v310_v17, 6 }
 0x36e   :  { %v1044_v19 = vpop.eup %1043 }
 0x36f   :  { %v312_v20 = vmul.f32 %v1044_v19, %v1042_v18 }
 0x371   :  { %v313_v21 = vpack.c.bf16 %v312_v20, %v312_v20 }
 0x373   :  { %v315_v22 = vrot.slane %v313_v21, 1 }
 0x375   :  { %316 = vrot.lane.b32.xlu1 %v315_v22, %s1146_s2 }
 0x3e7   :  { %v317_v23 = vpop.permute.xlu1 %316 }
 0x3e8   :  { %936 = vmatmul.mubr.msk.bf16.vlgmr.msra.gmra.mrb[4].mxu1 %vm163_vm1, %v317_v23 }
 0x3e9   :  { %486 = vmatpush1.bf16.msra.mxu1 %v1194_v1  ;;  %517 = vmatprep.mubr.bf16.mxu1 %v1145_v2 }
 0x3ea   :  { %487 = vmatprep.subr.bf16.mxu1 %v1209_v5 }
 0x3ed   :  { %488 = vmatpush1.bf16.msra.mxu1 %v1214_v6 }
 0x3ee   :  { %489 = vmatprep.subr.bf16.mxu1 %v1226_v9 }
 0x3f1   :  { %490 = vmatpush1.bf16.msra.mxu1 %v1232_v10 }
 0x3f2   :  { %491 = vmatprep.subr.bf16.mxu1 %v1241_v12 }
 0x3f5   :  { %492 = vmatpush1.bf16.msra.mxu1 %v1248_v13 }
 0x3f6   :  { %642 = vmatprep.subr.bf16.mxu1 %v1189_v0 }
 0x4bb   :  { %v355_v26 = vpop.f32.mrb[4].mxu1 }
 0x4bc   :  { %v364_v28 = vrot.slane %v355_v26, 4  ;;  %v357_v29 = vpop.f32.mrb[5].mxu1 }
 0x4bd   :  { %v359_v30 = vpop.f32.mrb[6].mxu1  ;;  %v365_v35 = vrot.slane %v357_v29, 4 }
 0x4be   :  { %v368_v31 = vadd.f32 %v364_v28, %v1275_v24  ;;  %v360_v32 = vpop.f32.mrb[7].mxu1 }
 0x4bf   :  { %v369_v36 = vadd.f32 %v365_v35, %v1282_v34 }
 0x4c0   :  { %v937_v33 = vmul.f32 -1.442695, %v368_v31 }
 0x4c1   :  { %v938_v44 = vmul.f32 -1.442695, %v369_v36 }
 0x4c2   :  { %1045 = vpow2.f32 %v937_v33 }
 0x4c3   :  { %1047 = vtanh.f32 %v369_v36 }
 0x4cc   :  { %v1046_v37 = vpop.eup %1045 }
 0x4cd   :  { %v373_v38 = vadd.f32 1.0, %v1046_v37  ;;  %v1048_v39 = vpop.eup %1047 }
 0x4cf   :  { %1049 = vrcp.f32 %v373_v38 }
 0x4d0   :  { %1051 = vpow2.f32 %v938_v44 }
 0x4d9   :  { %v1050_v41 = vpop.eup %1049 }
 0x4da   :  { %v387_v42 = vmul.f32 %v1050_v41, %v1048_v39  ;;  %v386_v43 = vmul.f32 %v1050_v41, %v384_v40  ;;  %v1052_v45 = vpop.eup %1051 }
 0x4db   :  { %v380_v46 = vadd.f32 1.0, %v1052_v45 }
 0x4dc   :  { %389 = vrot.lane.b32.xlu0 %v387_v42, %s1146_s2 }
 0x4dd   :  { %1053 = vrcp.f32 %v380_v46 }
 0x4e7   :  { %v1054_v49 = vpop.eup %1053 }
 0x54e   :  { %v390_v47 = vpop.permute.xlu0 %389 }
 0x54f   :  { %v392_v48 = vadd.f32 %v390_v47, %v386_v43 }
 0x551   :  { %1055 = vtanh.f32 %v392_v48  ;;  %v466_v8 = vrot.slane %v392_v48, 6 }
 0x55b   :  { %v1056_v50 = vpop.eup %1055 }
 0x55c   :  { %v394_v51 = vmul.f32 %v1056_v50, %v1054_v49 }
 0x55e   :  { %v395_v52 = vpack.c.bf16 %v394_v51, %v394_v51 }
 0x560   :  { %v397_v53 = vrot.slane %v395_v52, 2 }
 0x562   :  { %398 = vrot.lane.b32.xlu1 %v397_v53, %s1146_s2 }
 0x5d4   :  { %v399_v54 = vpop.permute.xlu1 %398 }
 0x5d5   :  { %939 = vmatmul.mubr.msk.bf16.vlgmr.msra.gmra.mrb[8].mxu0 %vm163_vm1, %v399_v54 }
 0x5d6   :  { %561 = vmatpush1.bf16.msra.mxu0 %v1194_v1  ;;  %592 = vmatprep.mubr.bf16.mxu0 %v1145_v2 }
 0x5d7   :  { %562 = vmatprep.subr.bf16.mxu0 %v1209_v5 }
 0x5da   :  { %563 = vmatpush1.bf16.msra.mxu0 %v1214_v6 }
 0x5db   :  { %564 = vmatprep.subr.bf16.mxu0 %v1226_v9 }
 0x5de   :  { %565 = vmatpush1.bf16.msra.mxu0 %v1232_v10 }
 0x5df   :  { %566 = vmatprep.subr.bf16.mxu0 %v1241_v12 }
 0x5e2   :  { %567 = vmatpush1.bf16.msra.mxu0 %v1248_v13 }
 0x5e3   :  { %724 = vmatprep.subr.bf16.mxu0 %v1189_v0 }
 0x6a8   :  { %v437_v55 = vpop.f32.mrb[8].mxu0 }
 0x6a9   :  { %v446_v56 = vrot.slane %v437_v55, 2  ;;  %v439_v57 = vpop.f32.mrb[9].mxu0 }
 0x6aa   :  { %v441_v58 = vpop.f32.mrb[10].mxu0  ;;  %v447_v62 = vrot.slane %v439_v57, 2 }
 0x6ab   :  { %v450_v59 = vadd.f32 %v446_v56, %v1275_v24  ;;  %v442_v60 = vpop.f32.mrb[11].mxu0 }
 0x6ac   :  { %v451_v63 = vadd.f32 %v447_v62, %v1282_v34 }
 0x6ad   :  { %v940_v61 = vmul.f32 -1.442695, %v450_v59 }
 0x6ae   :  { %v941_v15 = vmul.f32 -1.442695, %v451_v63 }
 0x6af   :  { %1057 = vpow2.f32 %v940_v61 }
 0x6b0   :  { %1059 = vtanh.f32 %v451_v63 }
 0x6b9   :  { %v1058_v3 = vpop.eup %1057 }
 0x6ba   :  { %v455_v4 = vadd.f32 1.0, %v1058_v3  ;;  %v1060_v7 = vpop.eup %1059 }
 0x6bc   :  { %1061 = vrcp.f32 %v455_v4 }
 0x6bd   :  { %1063 = vpow2.f32 %v941_v15 }
 0x6c6   :  { %v1062_v11 = vpop.eup %1061 }
 0x6c7   :  { %v469_v0 = vmul.f32 %v1062_v11, %v1060_v7  ;;  %v468_v14 = vmul.f32 %v1062_v11, %v466_v8  ;;  %v1064_v24 = vpop.eup %1063 }
 0x6c8   :  { %v462_v16 = vadd.f32 1.0, %v1064_v24 }
 0x6c9   :  { %471 = vrot.lane.b32.xlu0 %v469_v0, %s1146_s2 }
 0x6ca   :  { %1065 = vrcp.f32 %v462_v16 }
 0x6d4   :  { %v1066_v34 = vpop.eup %1065 }
 0x73b   :  { %v472_v17 = vpop.permute.xlu0 %471 }
 0x73c   :  { %v474_v18 = vadd.f32 %v472_v17, %v468_v14 }
 0x73e   :  { %1067 = vtanh.f32 %v474_v18  ;;  %v542_v38 = vrot.slane %v474_v18, 6 }
 0x748   :  { %v1068_v19 = vpop.eup %1067 }
 0x749   :  { %v476_v20 = vmul.f32 %v1068_v19, %v1066_v34 }
 0x74b   :  { %v477_v21 = vpack.c.bf16 %v476_v20, %v476_v20 }
 0x74d   :  { %v479_v22 = vrot.slane %v477_v21, 3 }
 0x74f   :  { %480 = vrot.lane.b32.xlu1 %v479_v22, %s1146_s2 }
 0x7c1   :  { %v481_v23 = vpop.permute.xlu1 %480 }
 0x7c2   :  { %942 = vmatmul.mubr.msk.bf16.vlgmr.msra.gmra.mrb[8].mxu1 %vm163_vm1, %v481_v23 }
 0x7c3   :  { %643 = vmatpush1.bf16.msra.mxu1 %v1194_v1  ;;  %674 = vmatprep.mubr.bf16.mxu1 %v1145_v2 }
 0x7c4   :  { %644 = vmatprep.subr.bf16.mxu1 %v1209_v5 }
 0x7c7   :  { %645 = vmatpush1.bf16.msra.mxu1 %v1214_v6 }
 0x7c8   :  { %646 = vmatprep.subr.bf16.mxu1 %v1226_v9 }
 0x7cb   :  { %647 = vmatpush1.bf16.msra.mxu1 %v1232_v10 }
 0x7cc   :  { %648 = vmatprep.subr.bf16.mxu1 %v1241_v12 }
 0x7cf   :  { %649 = vmatpush1.bf16.msra.mxu1 %v1248_v13 }
 0x895   :  { %v519_v26 = vpop.f32.mrb[8].mxu1 }
 0x896   :  { %v526_v28 = vadd.f32 %v519_v26, %v1277_v25  ;;  %v521_v29 = vpop.f32.mrb[9].mxu1 }
 0x897   :  { %v523_v30 = vpop.f32.mrb[10].mxu1  ;;  %v527_v33 = vadd.f32 %v521_v29, %v1279_v27 }
 0x898   :  { %v943_v31 = vmul.f32 -1.442695, %v526_v28  ;;  %v524_v32 = vpop.f32.mrb[11].mxu1 }
 0x899   :  { %v944_v42 = vmul.f32 -1.442695, %v527_v33 }
 0x89a   :  { %1069 = vpow2.f32 %v943_v31 }
 0x89b   :  { %1071 = vtanh.f32 %v527_v33 }
 0x8a4   :  { %v1070_v35 = vpop.eup %1069 }
 0x8a5   :  { %v531_v36 = vadd.f32 1.0, %v1070_v35  ;;  %v1072_v37 = vpop.eup %1071 }
 0x8a7   :  { %1073 = vrcp.f32 %v531_v36 }
 0x8a8   :  { %1075 = vpow2.f32 %v944_v42 }
 0x8b1   :  { %v1074_v39 = vpop.eup %1073 }
 0x8b2   :  { %v545_v40 = vmul.f32 %v1074_v39, %v1072_v37  ;;  %v544_v41 = vmul.f32 %v1074_v39, %v542_v38  ;;  %v1076_v43 = vpop.eup %1075 }
 0x8b3   :  { %v538_v44 = vadd.f32 1.0, %v1076_v43 }
 0x8b4   :  { %547 = vrot.lane.b32.xlu0 %v545_v40, %s1146_s2 }
 0x8b5   :  { %1077 = vrcp.f32 %v538_v44 }
 0x8bf   :  { %v1078_v47 = vpop.eup %1077 }
 0x926   :  { %v548_v45 = vpop.permute.xlu0 %547 }
 0x927   :  { %v550_v46 = vadd.f32 %v548_v45, %v544_v41 }
 0x929   :  { %1079 = vtanh.f32 %v550_v46 }
 0x933   :  { %v1080_v48 = vpop.eup %1079 }
 0x934   :  { %v552_v49 = vmul.f32 %v1080_v48, %v1078_v47 }
 0x936   :  { %v553_v50 = vpack.c.bf16 %v552_v49, %v552_v49 }
 0x938   :  { %555 = vrot.lane.b32.xlu1 %v553_v50, %s1146_s2 }
 0x9aa   :  { %v556_v51 = vpop.permute.xlu1 %555 }
 0x9ab   :  { %945 = vmatmul.mubr.msk.bf16.vlgmr.msra.gmra.mrb[12].mxu0 %vm163_vm1, %v556_v51 }
 0x9ac   :  { %725 = vmatpush1.bf16.msra.mxu0 %v1194_v1  ;;  %756 = vmatprep.mubr.bf16.mxu0 %v1145_v2 }
 0x9ad   :  { %726 = vmatprep.subr.bf16.mxu0 %v1209_v5 }
 0x9b0   :  { %727 = vmatpush1.bf16.msra.mxu0 %v1214_v6 }
 0x9b1   :  { %728 = vmatprep.subr.bf16.mxu0 %v1226_v9 }
 0x9b4   :  { %729 = vmatpush1.bf16.msra.mxu0 %v1232_v10 }
 0x9b5   :  { %730 = vmatprep.subr.bf16.mxu0 %v1241_v12  ;;  %v623_v12 = vrot.slane %v550_v46, 6 }
 0x9b8   :  { %731 = vmatpush1.bf16.msra.mxu0 %v1248_v13 }
 0xa7e   :  { %v594_v52 = vpop.f32.mrb[12].mxu0 }
 0xa7f   :  { %v603_v53 = vrot.slane %v594_v52, 6  ;;  %v596_v54 = vpop.f32.mrb[13].mxu0 }
 0xa80   :  { %v598_v55 = vpop.f32.mrb[14].mxu0  ;;  %v604_v5 = vrot.slane %v596_v54, 6 }
 0xa81   :  { %v607_v1 = vadd.f32 %v603_v53, %v1277_v25  ;;  %v599_v56 = vpop.f32.mrb[15].mxu0 }
 0xa82   :  { %v608_v6 = vadd.f32 %v604_v5, %v1279_v27 }
 0xa83   :  { %v946_v2 = vmul.f32 -1.442695, %v607_v1 }
 0xa84   :  { %v947_v60 = vmul.f32 -1.442695, %v608_v6 }
 0xa85   :  { %1081 = vpow2.f32 %v946_v2 }
 0xa86   :  { %1083 = vtanh.f32 %v608_v6  ;;  %v799_v6 = vld [vmem:[%s1412_s4 + $0x8] sm:$0xff] }
 0xa8f   :  { %v1082_v57 = vpop.eup %1081 }
 0xa90   :  { %v612_v9 = vadd.f32 1.0, %v1082_v57  ;;  %v1084_v10 = vpop.eup %1083  ;;  %v1147_v57 = vmov 0.0|0.0  }
 0xa91   :  { %984 = vmatprep.subr.bf16.mxu1 %v1147_v57 }
 0xa92   :  { %1085 = vrcp.f32 %v612_v9 }
 0xa93   :  { %1087 = vpow2.f32 %v947_v60 }
 0xa9c   :  { %v1086_v58 = vpop.eup %1085 }
 0xa9d   :  { %v626_v13 = vmul.f32 %v1086_v58, %v1084_v10  ;;  %v625_v59 = vmul.f32 %v1086_v58, %v623_v12  ;;  %v1088_v61 = vpop.eup %1087  ;;  %v801_v10 = vld [vmem:[%s1412_s4 + $0x18] sm:$0xff]  ;;  %v1149_v12 = vmov 0.0  }
 0xa9e   :  { %v619_v62 = vadd.f32 1.0, %v1088_v61  ;;  %v804_v61 = vld [vmem:[%s1412_s4 + $0x30] sm:$0xff] }
 0xa9f   :  { %628 = vrot.lane.b32.xlu0 %v626_v13, %s1146_s2  ;;  %v802_v13 = vld [vmem:[%s1412_s4 + $0x20] sm:$0xff] }
 0xaa0   :  { %1089 = vrcp.f32 %v619_v62  ;;  %v805_v62 = vld [vmem:[%s1412_s4 + $0x38] sm:$0xff] }
 0xaaa   :  { %v1090_v4 = vpop.eup %1089 }
 0xb11   :  { %v629_v63 = vpop.permute.xlu0 %628 }
 0xb12   :  { %v631_v3 = vadd.f32 %v629_v63, %v625_v59  ;;  %v803_v59 = vld [vmem:[%s1412_s4 + $0x28] sm:$0xff]  ;;  %v994_v63 = vpack.c.bf16 %v805_v62, %v804_v61 }
 0xb13   :  { %v991_v60 = vpack.c.bf16 %v803_v59, %v802_v13 }
 0xb14   :  { %1091 = vtanh.f32 %v631_v3  ;;  %v705_v28 = vrot.slane %v631_v3, 6 }
 0xb1e   :  { %v1092_v7 = vpop.eup %1091 }
 0xb1f   :  { %v633_v8 = vmul.f32 %v1092_v7, %v1090_v4 }
 0xb21   :  { %v634_v11 = vpack.c.bf16 %v633_v8, %v633_v8 }
 0xb23   :  { %v636_v0 = vrot.slane %v634_v11, 1 }
 0xb25   :  { %637 = vrot.lane.b32.xlu1 %v636_v0, %s1146_s2 }
 0xb97   :  { %v638_v14 = vpop.permute.xlu1 %637 }
 0xb98   :  { %948 = vmatmul.mubr.msk.bf16.vlgmr.msra.gmra.mrb[12].mxu1 %vm163_vm1, %v638_v14 }
 0xb99   :  { %981 = vmatprep.mubr.msk.f32.mxu1 %vm1148_vm2, %v1149_v12 }
 0xc6b   :  { %v676_v15 = vpop.f32.mrb[12].mxu1 }
 0xc6c   :  { %v685_v24 = vrot.slane %v676_v15, 4  ;;  %v678_v16 = vpop.f32.mrb[13].mxu1 }
 0xc6d   :  { %v680_v17 = vpop.f32.mrb[14].mxu1  ;;  %v686_v20 = vrot.slane %v678_v16, 4 }
 0xc6e   :  { %v689_v18 = vadd.f32 %v685_v24, %v1277_v25  ;;  %v681_v34 = vpop.f32.mrb[15].mxu1  ;;  %v954_v17 = vld [vmem:[%s1413_s5] ss:$0 sm:$0xff]  ;;  %s909_s5 = sshll.u32 %s1150_s15, 4  ;;  %s910_s5 = int_to_ptr.vmem [resolvable:$true] %s909_s5 }
 0xc6f   :  { %v690_v21 = vadd.f32 %v686_v20, %v1279_v27  ;;  %s1121_s16 = scalar_lea.vmem %s910_s5, 32  ;;  %p1126_p1 = scmp.lt.s32.totalorder %s910_s5, %s910_s5 }
 0xc70   :  { %v949_v19 = vmul.f32 -1.442695, %v689_v18  ;;  %p1122_p0 = scmp.ne.s32.totalorder %s910_s5, %s1121_s16  ;;  %p1127_p2 = scmp.lt.s32.totalorder %s1121_s16, %s1121_s16 }
 0xc71   :  { %v950_v32 = vmul.f32 -1.442695, %v690_v21 }
 0xc72   :  { %1093 = vpow2.f32 %v949_v19  ;;  %p1128_p3 = por %p1127_p2, %p1126_p1 }
 0xc73   :  { %1095 = vtanh.f32 %v690_v21 }
 0xc74   :  { %p1129_p4 = pnand %p1128_p3, %p1122_p0 }
 0xc7c   :  { %v1094_v22 = vpop.eup %1093 }
 0xc7d   :  { %v694_v23 = vadd.f32 1.0, %v1094_v22  ;;  %v1096_v26 = vpop.eup %1095 }
 0xc7f   :  { %1097 = vrcp.f32 %v694_v23 }
 0xc80   :  { %1099 = vpow2.f32 %v950_v32 }
 0xc89   :  { %v1098_v29 = vpop.eup %1097 }
 0xc8a   :  { %v708_v30 = vmul.f32 %v1098_v29, %v1096_v26  ;;  %v707_v31 = vmul.f32 %v1098_v29, %v705_v28  ;;  %v1100_v33 = vpop.eup %1099 }
 0xc8b   :  { %v701_v35 = vadd.f32 1.0, %v1100_v33 }
 0xc8c   :  { %710 = vrot.lane.b32.xlu0 %v708_v30, %s1146_s2 }
 0xc8d   :  { %1101 = vrcp.f32 %v701_v35 }
 0xc97   :  { %v1102_v38 = vpop.eup %1101 }
 0xcfe   :  { %v711_v36 = vpop.permute.xlu0 %710 }
 0xcff   :  { %v713_v37 = vadd.f32 %v711_v36, %v707_v31 }
 0xd01   :  { %1103 = vtanh.f32 %v713_v37  ;;  %v787_v1 = vrot.slane %v713_v37, 6 }
 0xd0b   :  { %v1104_v39 = vpop.eup %1103 }
 0xd0c   :  { %v715_v40 = vmul.f32 %v1104_v39, %v1102_v38 }
 0xd0e   :  { %v716_v41 = vpack.c.bf16 %v715_v40, %v715_v40 }
 0xd10   :  { %v718_v42 = vrot.slane %v716_v41, 2 }
 0xd12   :  { %719 = vrot.lane.b32.xlu1 %v718_v42, %s1146_s2 }
 0xd84   :  { %v720_v43 = vpop.permute.xlu1 %719 }
 0xd85   :  { %951 = vmatmul.mubr.msk.bf16.vlgmr.msra.gmra.mrb[16].mxu0 %vm163_vm1, %v720_v43 }
 0xe58   :  { %v758_v44 = vpop.f32.mrb[16].mxu0 }
 0xe59   :  { %v767_v45 = vrot.slane %v758_v44, 2  ;;  %v760_v46 = vpop.f32.mrb[17].mxu0 }
 0xe5a   :  { %v762_v47 = vpop.f32.mrb[18].mxu0  ;;  %v768_v51 = vrot.slane %v760_v46, 2 }
 0xe5b   :  { %v771_v48 = vadd.f32 %v767_v45, %v1277_v25  ;;  %v763_v49 = vpop.f32.mrb[19].mxu0  ;;  %v798_v25 = vld [vmem:[%s1412_s4] sm:$0xff] }
 0xe5c   :  { %v772_v52 = vadd.f32 %v768_v51, %v1279_v27  ;;  %v800_v27 = vld [vmem:[%s1412_s4 + $0x10] sm:$0xff]  ;;  %v985_v9 = vpack.c.bf16 %v799_v6, %v798_v25 }
 0xe5d   :  { %v952_v50 = vmul.f32 -1.442695, %v771_v48  ;;  %v988_v58 = vpack.c.bf16 %v801_v10, %v800_v27 }
 0xe5e   :  { %986 = vmatpush3.bf16.msra.mxu1 %v985_v9  ;;  %v953_v3 = vmul.f32 -1.442695, %v772_v52 }
 0xe5f   :  { %1105 = vpow2.f32 %v952_v50  ;;  %987 = vmatprep.subr.bf16.mxu1 %v1147_v57 }
 0xe60   :  { %1107 = vtanh.f32 %v772_v52 }
 0xe62   :  { %989 = vmatpush3.bf16.msra.mxu1 %v988_v58 }
 0xe63   :  { %990 = vmatprep.subr.bf16.mxu1 %v1147_v57 }
 0xe66   :  { %992 = vmatpush3.bf16.msra.mxu1 %v991_v60 }
 0xe67   :  { %993 = vmatprep.subr.bf16.mxu1 %v1147_v57 }
 0xe69   :  { %v1106_v53 = vpop.eup %1105 }
 0xe6a   :  { %v776_v54 = vadd.f32 1.0, %v1106_v53  ;;  %v1108_v55 = vpop.eup %1107  ;;  %995 = vmatpush3.bf16.msra.mxu1 %v994_v63 }
 0xe6c   :  { %1109 = vrcp.f32 %v776_v54 }
 0xe6d   :  { %1111 = vpow2.f32 %v953_v3 }
 0xe76   :  { %v1110_v56 = vpop.eup %1109 }
 0xe77   :  { %v790_v2 = vmul.f32 %v1110_v56, %v1108_v55  ;;  %v789_v5 = vmul.f32 %v1110_v56, %v787_v1  ;;  %v1112_v4 = vpop.eup %1111 }
 0xe78   :  { %v783_v7 = vadd.f32 1.0, %v1112_v4 }
 0xe79   :  { %792 = vrot.lane.b32.xlu0 %v790_v2, %s1146_s2 }
 0xe7a   :  { %1113 = vrcp.f32 %v783_v7 }
 0xe84   :  { %v1114_v0 = vpop.eup %1113 }
 0xeeb   :  { %v793_v8 = vpop.permute.xlu0 %792 }
 0xeec   :  { %v795_v11 = vadd.f32 %v793_v8, %v789_v5 }
 0xeee   :  { %1115 = vtanh.f32 %v795_v11 }
 0xef8   :  { %v1116_v14 = vpop.eup %1115 }
 0xef9   :  { %v797_v15 = vmul.f32 %v1116_v14, %v1114_v0 }
 0xefb   :  { %v814_v24 = vrot.slane %v797_v15, 6 }
 0xefd   :  { %815 = vrot.lane.b32.xlu1 %v814_v24, %s1146_s2 }
 0xf6f   :  { %v816_v16 = vpop.permute.xlu1 %815 }
 0xf70   :  { %982 = vmatmul.mubr.msk.f32.vlgmr.msra.gmra.mrb[16].mxu1 %vm163_vm1, %v816_v16 }
0x1043   :  { %v885_v18 = vpop.f32.mrb[16].mxu1 }
0x1044   :  { %v886_v34 = vadd.f32 %v954_v17, %v885_v18  ;;  %v983_v19 = vpop.f32.mrb[17].mxu1 }
0x1046   :  { %v890_v20 = vsel %vm889_vm3, %v886_v34, -inf }
0x1047   :  { %891 = vmax.xlane.f32.xlu0 %v890_v20 }
0x10d4   :  { %v892_v21 = vpop.xlane.xlu0 %891 }
0x10d5   :  { %v893_v22 = vsub.f32 %v886_v34, %v892_v21 }
0x10d7   :  { %v894_v23 = vmul.f32 1.442695, %v893_v22 }
0x10d9   :  { %1117 = vpow2.f32 %v894_v23 }
0x10e3   :  { %v1118_v26 = vpop.eup %1117 }
0x10e4   :  { %v896_v28 = vsel %vm889_vm3, %v1118_v26, 0.0 }
0x10e5   :  { %897 = vadd.xlane.f32.xlu1 %v896_v28 }
0x1172   :  { %v898_v29 = vpop.xlane.xlu1 %897 }
0x1173   :  { %1119 = vlog2.f32 %v898_v29 }
0x117d   :  { %v1120_v30 = vpop.eup %1119 }
0x117e   :  { %v900_v31 = vmul.f32 0.6931472, %v1120_v30 }
0x1180   :  { %v901_v32 = vsub.f32 %v893_v22, %v900_v31 }
0x1182   :  { %902 = vst.msk [vmem:[#allocation2] sm:$0x3] %vm889_vm3, %v901_v32 }
0x1183   :  { %1132 = shalt.err (!%p1129_p4)
}
0x1184   :  { %s1133_s1 = scalar_lea.hbm %s1414_s6, 32 }
0x1185   :  { %p1134_p5 = scmp.ne.s32.totalorder %s1414_s6, %s1133_s1  ;;  %p1137_p6 = scmp.lt.u32.totalorder %s1133_s1, %s1414_s6 }
0x1187   :  { %p1139_p7 = pnand %p1137_p6, %p1134_p5 }
0x1189   :  { %1142 = shalt.err (!%p1139_p7)
}
0x118a   :  { %912 = dma.vmem_to_hbm [thread:$0]  %s910_s5, 32, %s1414_s6, [#allocation3]  }
0x118b   :  { %1143 = dma.done.wait [#allocation3], 32  }
0x118c   :  { %1144 = vsyncadd [#allocation3], 4294967264 }
0x118d   :  { %916 = vsyncpa [#allocation3], 1 }

</bundles_post_ra>
